<compile_context>
chip_gen: v6e
topology: v6e:2x2x1
jax: 0.10.0
libtpu: 0.0.40
codegen_flags: <defaults>
</compile_context>

<pallas_src>
import functools

import numpy as np
import jax
import jax.numpy as jnp
from jax import lax
from jax.experimental import pallas as pl
from jax.experimental.pallas import tpu as pltpu

EPS = 1e-5


def _pick_block_batch(n, max_b=16):
    """Largest divisor of n that is <= max_b and keeps grid length >= 2 (v7x)."""
    upper = min(max_b, max(1, n // 2))
    for b in range(upper, 0, -1):
        if n % b == 0:
            return b
    return 1


def _resnet_block_kernel(x_ref, m_ref, w1_ref, b1_ref, w2_ref, b2_ref,
                         w3_ref, b3_ref, o_ref, slab1_ref, slab2_ref,
                         *, H, W, block_b):
    f32 = jnp.float32
    HW = H * W
    L = block_b * HW            # lane width of the block (B examples folded)
    inv_hw = 1.0 / HW

    def fill_slab(a, slab_ref):
        # a: (n_in, L).  Write the 9 shifted+masked copies into the im2col slab
        # (9*n_in, L); one roll + one mask multiply per tap for the whole batch.
        n_in = slab_ref.shape[0] // 9
        for t in range(9):
            dh, dw = t // 3 - 1, t % 3 - 1
            s = dh * W + dw                       # flattened spatial shift
            rows = pl.ds(t * n_in, n_in)
            if s == 0:
                slab_ref[rows, :] = a             # center tap: no roll, no mask
            else:
                shifted = pltpu.roll(a, (-s) % L, axis=1)   # shifted[p] = a[p+s]
                slab_ref[rows, :] = shifted * m_ref[pl.ds(t, 1), :]

    def conv3x3(a, w_ref, b_ref, slab_ref):
        # Single fused MXU contraction: (n_out, 9*n_in) @ (9*n_in, L).
        fill_slab(a, slab_ref)
        return jnp.dot(w_ref[...], slab_ref[...],
                       preferred_element_type=f32) + b_ref[...]

    def inorm(h):
        # Per-example InstanceNorm over lane-aligned 256-wide segments.
        # sum and sum-of-squares fused in one pass; var = E[h^2] - mean^2.
        segs = []
        for b in range(block_b):
            seg = h if block_b == 1 else h[:, b * HW:(b + 1) * HW]
            s1 = jnp.sum(seg, axis=1, keepdims=True)
            s2 = jnp.sum(seg * seg, axis=1, keepdims=True)
            mu = s1 * inv_hw
            var = s2 * inv_hw - mu * mu
            segs.append((seg - mu) * lax.rsqrt(var + EPS))
        return segs[0] if block_b == 1 else jnp.concatenate(segs, axis=1)

    x = x_ref[...]                                   # (Cin, L) f32

    h = conv3x3(x, w1_ref, b1_ref, slab1_ref)        # Cin -> Cf
    h = jnp.maximum(inorm(h), 0.0)
    h = conv3x3(h, w2_ref, b2_ref, slab2_ref)        # Cf -> Cin
    h = inorm(h)

    res = x + h                                      # residual add
    out = jnp.dot(w3_ref[...], res,                  # 1x1 conv: (Cout,Cin)@(Cin,L)
                  preferred_element_type=f32) + b3_ref[...]
    o_ref[...] = out                                 # single wide, unmasked store


def resnet_block_pallas(x, params, *, max_block_batch=16):
    N, Cin, H, W = x.shape
    w1, b1, w2, b2, w3, b3 = params
    Cf = w1.shape[0]
    Cout = w3.shape[0]
    HW = H * W

    B = _pick_block_batch(N, max_block_batch)        # examples per grid step
    L = B * HW

    # Lane-dense layout with batch folded into the lane axis: (Cin, N*HW).
    x2 = jnp.transpose(x.reshape(N, Cin, HW), (1, 0, 2)) \
            .reshape(Cin, N * HW).astype(jnp.float32)

    # Fused-tap weights, PyTorch (O, I, kH, kW) -> (O, 9*I) with tap-major columns:
    # column block t = kh*3 + kw holds w[:, :, kh, kw].
    w1f = jnp.transpose(w1, (0, 2, 3, 1)).reshape(Cf, 9 * Cin).astype(jnp.float32)
    w2f = jnp.transpose(w2, (0, 2, 3, 1)).reshape(Cin, 9 * Cf).astype(jnp.float32)
    w3m = w3.reshape(Cout, Cin).astype(jnp.float32)
    b1c = b1.reshape(Cf, 1).astype(jnp.float32)
    b2c = b2.reshape(Cin, 1).astype(jnp.float32)
    b3c = b3.reshape(Cout, 1).astype(jnp.float32)

    # Boundary masks for the 9 taps of a pad=1 3x3 conv, tiled per example so a
    # single lane roll over the folded (C, B*HW) slab never mixes examples.
    masks = np.zeros((9, H, W), np.float32)
    for t in range(9):
        dh, dw = t // 3 - 1, t % 3 - 1
        masks[t, max(0, -dh):H - max(0, dh), max(0, -dw):W - max(0, dw)] = 1.0
    masks = jnp.asarray(np.tile(masks.reshape(9, HW), (1, B)))

    kernel = functools.partial(_resnet_block_kernel, H=H, W=W, block_b=B)

    vmem = pl.BlockSpec(memory_space=pltpu.MemorySpace.VMEM)  # small, grid-invariant

    out = pl.pallas_call(
        kernel,
        out_shape=jax.ShapeDtypeStruct((Cout, N * HW), jnp.float32),
        grid=(N // B,),
        in_specs=[
            pl.BlockSpec((Cin, L), lambda n: (0, n)),   # (Cin, B*HW) activation block
            vmem,                                       # tap masks   (9, B*HW)
            vmem, vmem,                                 # w1 fused, b1
            vmem, vmem,                                 # w2 fused, b2
            vmem, vmem,                                 # w3, b3
        ],
        out_specs=pl.BlockSpec((Cout, L), lambda n: (0, n)),
        scratch_shapes=[
            pltpu.VMEM((9 * Cin, L), jnp.float32),      # im2col slab for conv1
            pltpu.VMEM((9 * Cf, L), jnp.float32),       # im2col slab for conv2
        ],
        compiler_params=pltpu.CompilerParams(dimension_semantics=("parallel",)),
    )(x2, masks, w1f, b1c, w2f, b2c, w3m, b3c)

    return jnp.transpose(out.reshape(Cout, N, HW), (1, 0, 2)).reshape(N, Cout, H, W)


# ---------------- pure-JAX reference (for correctness check) ----------------
def _conv_ref(x, w, b, pad):
    y = lax.conv_general_dilated(
        x, w, window_strides=(1, 1), padding=[(pad, pad), (pad, pad)],
        dimension_numbers=("NCHW", "OIHW", "NCHW"),
        precision=lax.Precision.HIGHEST)
    return y + b[None, :, None, None]


def _inorm_ref(x):
    mu = jnp.mean(x, axis=(2, 3), keepdims=True)
    var = jnp.var(x, axis=(2, 3), keepdims=True)
    return (x - mu) / jnp.sqrt(var + EPS)


def resnet_block_ref(x, params):
    w1, b1, w2, b2, w3, b3 = params
    h = _conv_ref(x, w1, b1, 1)
    h = jax.nn.relu(_inorm_ref(h))
    h = _conv_ref(h, w2, b2, 1)
    h = _inorm_ref(h)
    return _conv_ref(x + h, w3, b3, 0)


if __name__ == "__main__":
    key = jax.random.PRNGKey(0)
    N, Cin, H, W = 2, 4, 16, 16
    Cout = 8                  # output_channels
    Cf = Cout                 # feature_channels defaults to output_channels

    ks = jax.random.split(key, 7)
    x = jax.random.normal(ks[0], (N, Cin, H, W), jnp.float32)
    w1 = jax.random.normal(ks[1], (Cf, Cin, 3, 3), jnp.float32) * 0.2
    b1 = jax.random.normal(ks[2], (Cf,), jnp.float32) * 0.1
    w2 = jax.random.normal(ks[3], (Cin, Cf, 3, 3), jnp.float32) * 0.2
    b2 = jax.random.normal(ks[4], (Cin,), jnp.float32) * 0.1
    w3 = jax.random.normal(ks[5], (Cout, Cin, 1, 1), jnp.float32) * 0.2
    b3 = jax.random.normal(ks[6], (Cout,), jnp.float32) * 0.1
    params = (w1, b1, w2, b2, w3, b3)

    out = jax.block_until_ready(resnet_block_pallas(x, params))
    ref = resnet_block_ref(x, params)

    assert out.shape == (N, Cout, H, W), out.shape
    err = float(jnp.max(jnp.abs(out - ref)))
    # Tolerance accounts for DEFAULT-precision (bf16-pass) MXU matmuls vs the
    # HIGHEST-precision reference, as recommended by the performance review.
    assert jnp.allclose(out, ref, atol=2e-2, rtol=2e-2), f"max abs err = {err}"
    print("KERNEL_OK")
</pallas_src>

<mosaic_0001>
module attributes {stable_mosaic.version = 11 : i64} {
  func.func @_resnet_block_kernel(%arg0: i32, %arg1: memref<4x256xf32, #tpu.memory_space<vmem>>, %arg2: memref<9x256xf32, #tpu.memory_space<vmem>>, %arg3: memref<8x36xf32, #tpu.memory_space<vmem>>, %arg4: memref<8x1xf32, #tpu.memory_space<vmem>>, %arg5: memref<4x72xf32, #tpu.memory_space<vmem>>, %arg6: memref<4x1xf32, #tpu.memory_space<vmem>>, %arg7: memref<8x4xf32, #tpu.memory_space<vmem>>, %arg8: memref<8x1xf32, #tpu.memory_space<vmem>>, %arg9: memref<8x256xf32, #tpu.memory_space<vmem>>, %arg10: memref<36x256xf32, #tpu.memory_space<vmem>>, %arg11: memref<72x256xf32, #tpu.memory_space<vmem>>) attributes {dimension_semantics = [#tpu.dimension_semantics<parallel>], iteration_bounds = array<i64: 2>, scalar_prefetch = 0 : i64, scratch_operands = 2 : i64, tpu.core_type = #tpu.core_type<tc>, window_params = [{transform_indices = @transform_0, window_bounds = array<i64: 4, 256>}, {pipeline_mode = #tpu.pipeline_mode<synchronous>, transform_indices = @transform_1, window_bounds = array<i64: 9, 256>}, {pipeline_mode = #tpu.pipeline_mode<synchronous>, transform_indices = @transform_2, window_bounds = array<i64: 8, 36>}, {pipeline_mode = #tpu.pipeline_mode<synchronous>, transform_indices = @transform_3, window_bounds = array<i64: 8, 1>}, {pipeline_mode = #tpu.pipeline_mode<synchronous>, transform_indices = @transform_4, window_bounds = array<i64: 4, 72>}, {pipeline_mode = #tpu.pipeline_mode<synchronous>, transform_indices = @transform_5, window_bounds = array<i64: 4, 1>}, {pipeline_mode = #tpu.pipeline_mode<synchronous>, transform_indices = @transform_6, window_bounds = array<i64: 8, 4>}, {pipeline_mode = #tpu.pipeline_mode<synchronous>, transform_indices = @transform_7, window_bounds = array<i64: 8, 1>}, {transform_indices = @transform_8, window_bounds = array<i64: 8, 256>}]} {
    %c0 = arith.constant 0 : index
    %c0_0 = arith.constant 0 : index
    %0 = vector.load %arg1[%c0, %c0_0] : memref<4x256xf32, #tpu.memory_space<vmem>>, vector<4x256xf32>
    %c17_i32 = arith.constant 17 : i32
    %1 = tpu.dynamic_rotate %0 by %c17_i32 dim 1 : vector<4x256xf32>, i32 -> vector<4x256xf32>
    %c0_1 = arith.constant 0 : index
    %c0_2 = arith.constant 0 : index
    %2 = vector.load %arg2[%c0_1, %c0_2] : memref<9x256xf32, #tpu.memory_space<vmem>>, vector<1x256xf32>
    %3 = vector.broadcast %2 : vector<1x256xf32> to vector<4x256xf32>
    %4 = arith.mulf %1, %3 : vector<4x256xf32>
    %c0_3 = arith.constant 0 : index
    %c0_4 = arith.constant 0 : index
    %5 = vector.load %arg10[%c0_3, %c0_4] : memref<36x256xf32, #tpu.memory_space<vmem>>, vector<4x256xf32>
    tpu.vector_store %arg10[%c0_3, %c0_4], %4 {strides = array<i32>} : memref<36x256xf32, #tpu.memory_space<vmem>>, vector<4x256xf32>,
    %c16_i32 = arith.constant 16 : i32
    %6 = tpu.dynamic_rotate %0 by %c16_i32 dim 1 : vector<4x256xf32>, i32 -> vector<4x256xf32>
    %c1 = arith.constant 1 : index
    %c0_5 = arith.constant 0 : index
    %7 = vector.load %arg2[%c1, %c0_5] : memref<9x256xf32, #tpu.memory_space<vmem>>, vector<1x256xf32>
    %8 = vector.broadcast %7 : vector<1x256xf32> to vector<4x256xf32>
    %9 = arith.mulf %6, %8 : vector<4x256xf32>
    %c4 = arith.constant 4 : index
    %c0_6 = arith.constant 0 : index
    %10 = vector.load %arg10[%c4, %c0_6] : memref<36x256xf32, #tpu.memory_space<vmem>>, vector<4x256xf32>
    tpu.vector_store %arg10[%c4, %c0_6], %9 {strides = array<i32>} : memref<36x256xf32, #tpu.memory_space<vmem>>, vector<4x256xf32>,
    %c15_i32 = arith.constant 15 : i32
    %11 = tpu.dynamic_rotate %0 by %c15_i32 dim 1 : vector<4x256xf32>, i32 -> vector<4x256xf32>
    %c2 = arith.constant 2 : index
    %c0_7 = arith.constant 0 : index
    %12 = vector.load %arg2[%c2, %c0_7] : memref<9x256xf32, #tpu.memory_space<vmem>>, vector<1x256xf32>
    %13 = vector.broadcast %12 : vector<1x256xf32> to vector<4x256xf32>
    %14 = arith.mulf %11, %13 : vector<4x256xf32>
    %c8 = arith.constant 8 : index
    %c0_8 = arith.constant 0 : index
    %15 = vector.load %arg10[%c8, %c0_8] : memref<36x256xf32, #tpu.memory_space<vmem>>, vector<4x256xf32>
    tpu.vector_store %arg10[%c8, %c0_8], %14 {strides = array<i32>} : memref<36x256xf32, #tpu.memory_space<vmem>>, vector<4x256xf32>,
    %c1_i32 = arith.constant 1 : i32
    %16 = tpu.dynamic_rotate %0 by %c1_i32 dim 1 : vector<4x256xf32>, i32 -> vector<4x256xf32>
    %c3 = arith.constant 3 : index
    %c0_9 = arith.constant 0 : index
    %17 = vector.load %arg2[%c3, %c0_9] : memref<9x256xf32, #tpu.memory_space<vmem>>, vector<1x256xf32>
    %18 = vector.broadcast %17 : vector<1x256xf32> to vector<4x256xf32>
    %19 = arith.mulf %16, %18 : vector<4x256xf32>
    %c12 = arith.constant 12 : index
    %c0_10 = arith.constant 0 : index
    %20 = vector.load %arg10[%c12, %c0_10] : memref<36x256xf32, #tpu.memory_space<vmem>>, vector<4x256xf32>
    tpu.vector_store %arg10[%c12, %c0_10], %19 {strides = array<i32>} : memref<36x256xf32, #tpu.memory_space<vmem>>, vector<4x256xf32>,
    %c16 = arith.constant 16 : index
    %c0_11 = arith.constant 0 : index
    %21 = vector.load %arg10[%c16, %c0_11] : memref<36x256xf32, #tpu.memory_space<vmem>>, vector<4x256xf32>
    tpu.vector_store %arg10[%c16, %c0_11], %0 {strides = array<i32>} : memref<36x256xf32, #tpu.memory_space<vmem>>, vector<4x256xf32>,
    %c255_i32 = arith.constant 255 : i32
    %22 = tpu.dynamic_rotate %0 by %c255_i32 dim 1 : vector<4x256xf32>, i32 -> vector<4x256xf32>
    %c5 = arith.constant 5 : index
    %c0_12 = arith.constant 0 : index
    %23 = vector.load %arg2[%c5, %c0_12] : memref<9x256xf32, #tpu.memory_space<vmem>>, vector<1x256xf32>
    %24 = vector.broadcast %23 : vector<1x256xf32> to vector<4x256xf32>
    %25 = arith.mulf %22, %24 : vector<4x256xf32>
    %c20 = arith.constant 20 : index
    %c0_13 = arith.constant 0 : index
    %26 = vector.load %arg10[%c20, %c0_13] : memref<36x256xf32, #tpu.memory_space<vmem>>, vector<4x256xf32>
    tpu.vector_store %arg10[%c20, %c0_13], %25 {strides = array<i32>} : memref<36x256xf32, #tpu.memory_space<vmem>>, vector<4x256xf32>,
    %c241_i32 = arith.constant 241 : i32
    %27 = tpu.dynamic_rotate %0 by %c241_i32 dim 1 : vector<4x256xf32>, i32 -> vector<4x256xf32>
    %c6 = arith.constant 6 : index
    %c0_14 = arith.constant 0 : index
    %28 = vector.load %arg2[%c6, %c0_14] : memref<9x256xf32, #tpu.memory_space<vmem>>, vector<1x256xf32>
    %29 = vector.broadcast %28 : vector<1x256xf32> to vector<4x256xf32>
    %30 = arith.mulf %27, %29 : vector<4x256xf32>
    %c24 = arith.constant 24 : index
    %c0_15 = arith.constant 0 : index
    %31 = vector.load %arg10[%c24, %c0_15] : memref<36x256xf32, #tpu.memory_space<vmem>>, vector<4x256xf32>
    tpu.vector_store %arg10[%c24, %c0_15], %30 {strides = array<i32>} : memref<36x256xf32, #tpu.memory_space<vmem>>, vector<4x256xf32>,
    %c240_i32 = arith.constant 240 : i32
    %32 = tpu.dynamic_rotate %0 by %c240_i32 dim 1 : vector<4x256xf32>, i32 -> vector<4x256xf32>
    %c7 = arith.constant 7 : index
    %c0_16 = arith.constant 0 : index
    %33 = vector.load %arg2[%c7, %c0_16] : memref<9x256xf32, #tpu.memory_space<vmem>>, vector<1x256xf32>
    %34 = vector.broadcast %33 : vector<1x256xf32> to vector<4x256xf32>
    %35 = arith.mulf %32, %34 : vector<4x256xf32>
    %c28 = arith.constant 28 : index
    %c0_17 = arith.constant 0 : index
    %36 = vector.load %arg10[%c28, %c0_17] : memref<36x256xf32, #tpu.memory_space<vmem>>, vector<4x256xf32>
    tpu.vector_store %arg10[%c28, %c0_17], %35 {strides = array<i32>} : memref<36x256xf32, #tpu.memory_space<vmem>>, vector<4x256xf32>,
    %c239_i32 = arith.constant 239 : i32
    %37 = tpu.dynamic_rotate %0 by %c239_i32 dim 1 : vector<4x256xf32>, i32 -> vector<4x256xf32>
    %c8_18 = arith.constant 8 : index
    %c0_19 = arith.constant 0 : index
    %38 = vector.load %arg2[%c8_18, %c0_19] : memref<9x256xf32, #tpu.memory_space<vmem>>, vector<1x256xf32>
    %39 = vector.broadcast %38 : vector<1x256xf32> to vector<4x256xf32>
    %40 = arith.mulf %37, %39 : vector<4x256xf32>
    %c32 = arith.constant 32 : index
    %c0_20 = arith.constant 0 : index
    %41 = vector.load %arg10[%c32, %c0_20] : memref<36x256xf32, #tpu.memory_space<vmem>>, vector<4x256xf32>
    tpu.vector_store %arg10[%c32, %c0_20], %40 {strides = array<i32>} : memref<36x256xf32, #tpu.memory_space<vmem>>, vector<4x256xf32>,
    %c0_21 = arith.constant 0 : index
    %c0_22 = arith.constant 0 : index
    %42 = vector.load %arg3[%c0_21, %c0_22] : memref<8x36xf32, #tpu.memory_space<vmem>>, vector<8x36xf32>
    %c0_23 = arith.constant 0 : index
    %c0_24 = arith.constant 0 : index
    %43 = vector.load %arg10[%c0_23, %c0_24] : memref<36x256xf32, #tpu.memory_space<vmem>>, vector<36x256xf32>
    %cst = arith.constant dense<0.000000e+00> : vector<8x256xf32>
    %44 = tpu.matmul %42, %43, %cst {dimension_numbers = #tpu.dot_dimension_numbers<[1], [0], [0], [1], [0, 0, 1, 1], [], []>} : vector<8x36xf32>, vector<36x256xf32>, vector<8x256xf32> -> vector<8x256xf32>
    %c0_25 = arith.constant 0 : index
    %c0_26 = arith.constant 0 : index
    %45 = vector.load %arg4[%c0_25, %c0_26] : memref<8x1xf32, #tpu.memory_space<vmem>>, vector<8x1xf32>
    %46 = vector.broadcast %45 : vector<8x1xf32> to vector<8x256xf32>
    %47 = arith.addf %44, %46 : vector<8x256xf32>
    %cst_27 = arith.constant dense<0.000000e+00> : vector<8xf32>
    %48 = vector.multi_reduction <add>, %47, %cst_27 [1] : vector<8x256xf32> to vector<8xf32>
    %49 = vector.shape_cast %48 : vector<8xf32> to vector<8x1xf32>
    %50 = arith.mulf %47, %47 : vector<8x256xf32>
    %cst_28 = arith.constant dense<0.000000e+00> : vector<8xf32>
    %51 = vector.multi_reduction <add>, %50, %cst_28 [1] : vector<8x256xf32> to vector<8xf32>
    %52 = vector.shape_cast %51 : vector<8xf32> to vector<8x1xf32>
    %cst_29 = arith.constant 3.906250e-03 : f32
    %53 = vector.broadcast %cst_29 : f32 to vector<8x1xf32>
    %54 = arith.mulf %49, %53 : vector<8x1xf32>
    %cst_30 = arith.constant 3.906250e-03 : f32
    %55 = vector.broadcast %cst_30 : f32 to vector<8x1xf32>
    %56 = arith.mulf %52, %55 : vector<8x1xf32>
    %57 = arith.mulf %54, %54 : vector<8x1xf32>
    %58 = arith.subf %56, %57 : vector<8x1xf32>
    %59 = vector.broadcast %54 : vector<8x1xf32> to vector<8x256xf32>
    %60 = arith.subf %47, %59 : vector<8x256xf32>
    %cst_31 = arith.constant 9.99999974E-6 : f32
    %61 = vector.broadcast %cst_31 : f32 to vector<8x1xf32>
    %62 = arith.addf %58, %61 : vector<8x1xf32>
    %63 = math.rsqrt %62 : vector<8x1xf32>
    %64 = vector.broadcast %63 : vector<8x1xf32> to vector<8x256xf32>
    %65 = arith.mulf %60, %64 : vector<8x256xf32>
    %cst_32 = arith.constant 0.000000e+00 : f32
    %66 = vector.broadcast %cst_32 : f32 to vector<8x256xf32>
    %67 = arith.maximumf %65, %66 : vector<8x256xf32>
    %c17_i32_33 = arith.constant 17 : i32
    %68 = tpu.dynamic_rotate %67 by %c17_i32_33 dim 1 : vector<8x256xf32>, i32 -> vector<8x256xf32>
    %c0_34 = arith.constant 0 : index
    %c0_35 = arith.constant 0 : index
    %69 = vector.load %arg2[%c0_34, %c0_35] : memref<9x256xf32, #tpu.memory_space<vmem>>, vector<1x256xf32>
    %70 = vector.broadcast %69 : vector<1x256xf32> to vector<8x256xf32>
    %71 = arith.mulf %68, %70 : vector<8x256xf32>
    %c0_36 = arith.constant 0 : index
    %c0_37 = arith.constant 0 : index
    %72 = vector.load %arg11[%c0_36, %c0_37] : memref<72x256xf32, #tpu.memory_space<vmem>>, vector<8x256xf32>
    tpu.vector_store %arg11[%c0_36, %c0_37], %71 {strides = array<i32>} : memref<72x256xf32, #tpu.memory_space<vmem>>, vector<8x256xf32>,
    %c16_i32_38 = arith.constant 16 : i32
    %73 = tpu.dynamic_rotate %67 by %c16_i32_38 dim 1 : vector<8x256xf32>, i32 -> vector<8x256xf32>
    %c1_39 = arith.constant 1 : index
    %c0_40 = arith.constant 0 : index
    %74 = vector.load %arg2[%c1_39, %c0_40] : memref<9x256xf32, #tpu.memory_space<vmem>>, vector<1x256xf32>
    %75 = vector.broadcast %74 : vector<1x256xf32> to vector<8x256xf32>
    %76 = arith.mulf %73, %75 : vector<8x256xf32>
    %c8_41 = arith.constant 8 : index
    %c0_42 = arith.constant 0 : index
    %77 = vector.load %arg11[%c8_41, %c0_42] : memref<72x256xf32, #tpu.memory_space<vmem>>, vector<8x256xf32>
    tpu.vector_store %arg11[%c8_41, %c0_42], %76 {strides = array<i32>} : memref<72x256xf32, #tpu.memory_space<vmem>>, vector<8x256xf32>,
    %c15_i32_43 = arith.constant 15 : i32
    %78 = tpu.dynamic_rotate %67 by %c15_i32_43 dim 1 : vector<8x256xf32>, i32 -> vector<8x256xf32>
    %c2_44 = arith.constant 2 : index
    %c0_45 = arith.constant 0 : index
    %79 = vector.load %arg2[%c2_44, %c0_45] : memref<9x256xf32, #tpu.memory_space<vmem>>, vector<1x256xf32>
    %80 = vector.broadcast %79 : vector<1x256xf32> to vector<8x256xf32>
    %81 = arith.mulf %78, %80 : vector<8x256xf32>
    %c16_46 = arith.constant 16 : index
    %c0_47 = arith.constant 0 : index
    %82 = vector.load %arg11[%c16_46, %c0_47] : memref<72x256xf32, #tpu.memory_space<vmem>>, vector<8x256xf32>
    tpu.vector_store %arg11[%c16_46, %c0_47], %81 {strides = array<i32>} : memref<72x256xf32, #tpu.memory_space<vmem>>, vector<8x256xf32>,
    %c1_i32_48 = arith.constant 1 : i32
    %83 = tpu.dynamic_rotate %67 by %c1_i32_48 dim 1 : vector<8x256xf32>, i32 -> vector<8x256xf32>
    %c3_49 = arith.constant 3 : index
    %c0_50 = arith.constant 0 : index
    %84 = vector.load %arg2[%c3_49, %c0_50] : memref<9x256xf32, #tpu.memory_space<vmem>>, vector<1x256xf32>
    %85 = vector.broadcast %84 : vector<1x256xf32> to vector<8x256xf32>
    %86 = arith.mulf %83, %85 : vector<8x256xf32>
    %c24_51 = arith.constant 24 : index
    %c0_52 = arith.constant 0 : index
    %87 = vector.load %arg11[%c24_51, %c0_52] : memref<72x256xf32, #tpu.memory_space<vmem>>, vector<8x256xf32>
    tpu.vector_store %arg11[%c24_51, %c0_52], %86 {strides = array<i32>} : memref<72x256xf32, #tpu.memory_space<vmem>>, vector<8x256xf32>,
    %c32_53 = arith.constant 32 : index
    %c0_54 = arith.constant 0 : index
    %88 = vector.load %arg11[%c32_53, %c0_54] : memref<72x256xf32, #tpu.memory_space<vmem>>, vector<8x256xf32>
    tpu.vector_store %arg11[%c32_53, %c0_54], %67 {strides = array<i32>} : memref<72x256xf32, #tpu.memory_space<vmem>>, vector<8x256xf32>,
    %c255_i32_55 = arith.constant 255 : i32
    %89 = tpu.dynamic_rotate %67 by %c255_i32_55 dim 1 : vector<8x256xf32>, i32 -> vector<8x256xf32>
    %c5_56 = arith.constant 5 : index
    %c0_57 = arith.constant 0 : index
    %90 = vector.load %arg2[%c5_56, %c0_57] : memref<9x256xf32, #tpu.memory_space<vmem>>, vector<1x256xf32>
    %91 = vector.broadcast %90 : vector<1x256xf32> to vector<8x256xf32>
    %92 = arith.mulf %89, %91 : vector<8x256xf32>
    %c40 = arith.constant 40 : index
    %c0_58 = arith.constant 0 : index
    %93 = vector.load %arg11[%c40, %c0_58] : memref<72x256xf32, #tpu.memory_space<vmem>>, vector<8x256xf32>
    tpu.vector_store %arg11[%c40, %c0_58], %92 {strides = array<i32>} : memref<72x256xf32, #tpu.memory_space<vmem>>, vector<8x256xf32>,
    %c241_i32_59 = arith.constant 241 : i32
    %94 = tpu.dynamic_rotate %67 by %c241_i32_59 dim 1 : vector<8x256xf32>, i32 -> vector<8x256xf32>
    %c6_60 = arith.constant 6 : index
    %c0_61 = arith.constant 0 : index
    %95 = vector.load %arg2[%c6_60, %c0_61] : memref<9x256xf32, #tpu.memory_space<vmem>>, vector<1x256xf32>
    %96 = vector.broadcast %95 : vector<1x256xf32> to vector<8x256xf32>
    %97 = arith.mulf %94, %96 : vector<8x256xf32>
    %c48 = arith.constant 48 : index
    %c0_62 = arith.constant 0 : index
    %98 = vector.load %arg11[%c48, %c0_62] : memref<72x256xf32, #tpu.memory_space<vmem>>, vector<8x256xf32>
    tpu.vector_store %arg11[%c48, %c0_62], %97 {strides = array<i32>} : memref<72x256xf32, #tpu.memory_space<vmem>>, vector<8x256xf32>,
    %c240_i32_63 = arith.constant 240 : i32
    %99 = tpu.dynamic_rotate %67 by %c240_i32_63 dim 1 : vector<8x256xf32>, i32 -> vector<8x256xf32>
    %c7_64 = arith.constant 7 : index
    %c0_65 = arith.constant 0 : index
    %100 = vector.load %arg2[%c7_64, %c0_65] : memref<9x256xf32, #tpu.memory_space<vmem>>, vector<1x256xf32>
    %101 = vector.broadcast %100 : vector<1x256xf32> to vector<8x256xf32>
    %102 = arith.mulf %99, %101 : vector<8x256xf32>
    %c56 = arith.constant 56 : index
    %c0_66 = arith.constant 0 : index
    %103 = vector.load %arg11[%c56, %c0_66] : memref<72x256xf32, #tpu.memory_space<vmem>>, vector<8x256xf32>
    tpu.vector_store %arg11[%c56, %c0_66], %102 {strides = array<i32>} : memref<72x256xf32, #tpu.memory_space<vmem>>, vector<8x256xf32>,
    %c239_i32_67 = arith.constant 239 : i32
    %104 = tpu.dynamic_rotate %67 by %c239_i32_67 dim 1 : vector<8x256xf32>, i32 -> vector<8x256xf32>
    %c8_68 = arith.constant 8 : index
    %c0_69 = arith.constant 0 : index
    %105 = vector.load %arg2[%c8_68, %c0_69] : memref<9x256xf32, #tpu.memory_space<vmem>>, vector<1x256xf32>
    %106 = vector.broadcast %105 : vector<1x256xf32> to vector<8x256xf32>
    %107 = arith.mulf %104, %106 : vector<8x256xf32>
    %c64 = arith.constant 64 : index
    %c0_70 = arith.constant 0 : index
    %108 = vector.load %arg11[%c64, %c0_70] : memref<72x256xf32, #tpu.memory_space<vmem>>, vector<8x256xf32>
    tpu.vector_store %arg11[%c64, %c0_70], %107 {strides = array<i32>} : memref<72x256xf32, #tpu.memory_space<vmem>>, vector<8x256xf32>,
    %c0_71 = arith.constant 0 : index
    %c0_72 = arith.constant 0 : index
    %109 = vector.load %arg5[%c0_71, %c0_72] : memref<4x72xf32, #tpu.memory_space<vmem>>, vector<4x72xf32>
    %c0_73 = arith.constant 0 : index
    %c0_74 = arith.constant 0 : index
    %110 = vector.load %arg11[%c0_73, %c0_74] : memref<72x256xf32, #tpu.memory_space<vmem>>, vector<72x256xf32>
    %cst_75 = arith.constant dense<0.000000e+00> : vector<4x256xf32>
    %111 = tpu.matmul %109, %110, %cst_75 {dimension_numbers = #tpu.dot_dimension_numbers<[1], [0], [0], [1], [0, 0, 1, 1], [], []>} : vector<4x72xf32>, vector<72x256xf32>, vector<4x256xf32> -> vector<4x256xf32>
    %c0_76 = arith.constant 0 : index
    %c0_77 = arith.constant 0 : index
    %112 = vector.load %arg6[%c0_76, %c0_77] : memref<4x1xf32, #tpu.memory_space<vmem>>, vector<4x1xf32>
    %113 = vector.broadcast %112 : vector<4x1xf32> to vector<4x256xf32>
    %114 = arith.addf %111, %113 : vector<4x256xf32>
    %cst_78 = arith.constant dense<0.000000e+00> : vector<4xf32>
    %115 = vector.multi_reduction <add>, %114, %cst_78 [1] : vector<4x256xf32> to vector<4xf32>
    %116 = vector.shape_cast %115 : vector<4xf32> to vector<4x1xf32>
    %117 = arith.mulf %114, %114 : vector<4x256xf32>
    %cst_79 = arith.constant dense<0.000000e+00> : vector<4xf32>
    %118 = vector.multi_reduction <add>, %117, %cst_79 [1] : vector<4x256xf32> to vector<4xf32>
    %119 = vector.shape_cast %118 : vector<4xf32> to vector<4x1xf32>
    %cst_80 = arith.constant 3.906250e-03 : f32
    %120 = vector.broadcast %cst_80 : f32 to vector<4x1xf32>
    %121 = arith.mulf %116, %120 : vector<4x1xf32>
    %cst_81 = arith.constant 3.906250e-03 : f32
    %122 = vector.broadcast %cst_81 : f32 to vector<4x1xf32>
    %123 = arith.mulf %119, %122 : vector<4x1xf32>
    %124 = arith.mulf %121, %121 : vector<4x1xf32>
    %125 = arith.subf %123, %124 : vector<4x1xf32>
    %126 = vector.broadcast %121 : vector<4x1xf32> to vector<4x256xf32>
    %127 = arith.subf %114, %126 : vector<4x256xf32>
    %cst_82 = arith.constant 9.99999974E-6 : f32
    %128 = vector.broadcast %cst_82 : f32 to vector<4x1xf32>
    %129 = arith.addf %125, %128 : vector<4x1xf32>
    %130 = math.rsqrt %129 : vector<4x1xf32>
    %131 = vector.broadcast %130 : vector<4x1xf32> to vector<4x256xf32>
    %132 = arith.mulf %127, %131 : vector<4x256xf32>
    %133 = arith.addf %0, %132 : vector<4x256xf32>
    %c0_83 = arith.constant 0 : index
    %c0_84 = arith.constant 0 : index
    %134 = vector.load %arg7[%c0_83, %c0_84] : memref<8x4xf32, #tpu.memory_space<vmem>>, vector<8x4xf32>
    %cst_85 = arith.constant dense<0.000000e+00> : vector<8x256xf32>
    %135 = tpu.matmul %134, %133, %cst_85 {dimension_numbers = #tpu.dot_dimension_numbers<[1], [0], [0], [1], [0, 0, 1, 1], [], []>} : vector<8x4xf32>, vector<4x256xf32>, vector<8x256xf32> -> vector<8x256xf32>
    %c0_86 = arith.constant 0 : index
    %c0_87 = arith.constant 0 : index
    %136 = vector.load %arg8[%c0_86, %c0_87] : memref<8x1xf32, #tpu.memory_space<vmem>>, vector<8x1xf32>
    %137 = vector.broadcast %136 : vector<8x1xf32> to vector<8x256xf32>
    %138 = arith.addf %135, %137 : vector<8x256xf32>
    %c0_88 = arith.constant 0 : index
    %c0_89 = arith.constant 0 : index
    %139 = vector.load %arg9[%c0_88, %c0_89] : memref<8x256xf32, #tpu.memory_space<vmem>>, vector<8x256xf32>
    tpu.vector_store %arg9[%c0_88, %c0_89], %138 {strides = array<i32>} : memref<8x256xf32, #tpu.memory_space<vmem>>, vector<8x256xf32>,
    return
  }
  func.func @transform_0(%arg0: i32) -> (i32, i32) {
    %c0_i32 = arith.constant 0 : i32
    %c0_i32_0 = arith.constant 0 : i32
    return %c0_i32, %arg0 : i32, i32
  }
  func.func @transform_1(%arg0: i32) -> (i32, i32) {
    %c0_i32 = arith.constant 0 : i32
    %c0_i32_0 = arith.constant 0 : i32
    %c0_i32_1 = arith.constant 0 : i32
    return %c0_i32, %c0_i32_0 : i32, i32
  }
  func.func @transform_2(%arg0: i32) -> (i32, i32) {
    %c0_i32 = arith.constant 0 : i32
    %c0_i32_0 = arith.constant 0 : i32
    %c0_i32_1 = arith.constant 0 : i32
    return %c0_i32, %c0_i32_0 : i32, i32
  }
  func.func @transform_3(%arg0: i32) -> (i32, i32) {
    %c0_i32 = arith.constant 0 : i32
    %c0_i32_0 = arith.constant 0 : i32
    %c0_i32_1 = arith.constant 0 : i32
    return %c0_i32, %c0_i32_0 : i32, i32
  }
  func.func @transform_4(%arg0: i32) -> (i32, i32) {
    %c0_i32 = arith.constant 0 : i32
    %c0_i32_0 = arith.constant 0 : i32
    %c0_i32_1 = arith.constant 0 : i32
    return %c0_i32, %c0_i32_0 : i32, i32
  }
  func.func @transform_5(%arg0: i32) -> (i32, i32) {
    %c0_i32 = arith.constant 0 : i32
    %c0_i32_0 = arith.constant 0 : i32
    %c0_i32_1 = arith.constant 0 : i32
    return %c0_i32, %c0_i32_0 : i32, i32
  }
  func.func @transform_6(%arg0: i32) -> (i32, i32) {
    %c0_i32 = arith.constant 0 : i32
    %c0_i32_0 = arith.constant 0 : i32
    %c0_i32_1 = arith.constant 0 : i32
    return %c0_i32, %c0_i32_0 : i32, i32
  }
  func.func @transform_7(%arg0: i32) -> (i32, i32) {
    %c0_i32 = arith.constant 0 : i32
    %c0_i32_0 = arith.constant 0 : i32
    %c0_i32_1 = arith.constant 0 : i32
    return %c0_i32, %c0_i32_0 : i32, i32
  }
  func.func @transform_8(%arg0: i32) -> (i32, i32) {
    %c0_i32 = arith.constant 0 : i32
    %c0_i32_0 = arith.constant 0 : i32
    return %c0_i32, %arg0 : i32, i32
  }
}

</mosaic_0001>

<bundles_post_ra>
// kernel: tpu_custom_call.1
= control target key start
LH: loop header
LB: loop body
LE: loop exit
PB: predicated region body
PF: predicated region fallthrough
CT: control target
= control target key end

     0   :  { %s1882_s0 = inlined_call_operand.hbm [shape: f32[4,512], index: 0, kind: input, shape index: {}]   ;;  %s1883_s1 = inlined_call_operand.vmem [shape: f32[9,256], index: 1, kind: input, shape index: {}]   ;;  %s1884_s2 = inlined_call_operand.hbm [shape: f32[8,36], index: 2, kind: input, shape index: {}]   ;;  %s1885_s3 = inlined_call_operand.vmem [shape: f32[8,1], index: 3, kind: input, shape index: {}]   ;;  %s1886_s4 = inlined_call_operand.vmem [shape: f32[4,72], index: 4, kind: input, shape index: {}]   ;;  %s1887_s5 = inlined_call_operand.vmem [shape: f32[4,1], index: 5, kind: input, shape index: {}]   ;;  %s1888_s6 = inlined_call_operand.vmem [shape: f32[8,4], index: 6, kind: input, shape index: {}]   ;;  %s1889_s7 = inlined_call_operand.vmem [shape: f32[8,1], index: 7, kind: input, shape index: {}]   ;;  %s1890_s8 = inlined_call_operand.hbm [shape: f32[8,512], index: 8, kind: output, shape index: {}]  }
   0x1   :  { %1896 = sst [smem:[#allocation15_spill]] %s1884_s2 }
   0x2   :  { %13 = vsyncpa [#allocation5], 0 }
   0x3   :  { %15 = vsyncpa [#allocation5 + $0x1], 0 }
   0x4   :  { %16 = vsyncpa [#allocation8], 0 }
   0x5   :  { %17 = vsyncpa [#allocation6], 0 }
   0x6   :  { %19 = vsyncpa [#allocation6 + $0x1], 0  ;;  %s1463_s27 = smov 0   ;;  %s1465_s28 = smov 0  }
   0x7   :  { %s1467_s29 = smov 0   ;;  %s1469_s30 = smov 0  }
   0x8 LB: > { %1897 = sst [smem:[#allocation13_spill]] %s1399_s29  ;;  %s1484_s9 = sadd.s32 4294967295, %s1403_s30   ;;  %s1403_s30 = sphi %s1469_s30, %s1919_s30   ;;  %s1399_s29 = sphi %s1467_s29, %s1916_s29   ;;  %s1395_s28 = sphi %s1465_s28, %s1918_s28   ;;  %s1391_s27 = sphi %s1463_s27, %s1917_s27  }
   0x9   : > { %s1169_s10 = sadd.s32 4294967294, %s1403_s30   ;;  %p45_p0 = scmp.ne.s32.totalorder %s1395_s28, %s1391_s27 }
   0xa   : > { %p1891_p1 = scmp.eq.s32.totalorder %s1484_s9, 0  ;;  %p222_p3 = scmp.eq.s32.totalorder %s1169_s10, 1 }
   0xb   : > { %p1170_p5 = scmp.ge.s32.totalorder %s1403_s30, 1  ;;  %p229_p7 = scmp.lt.s32.totalorder %s1403_s30, 3 }
   0xc   : > { %p1493_p4 = por %p1891_p1, %p45_p0  ;;  %p1498_p6 = por %p222_p3, %p45_p0 }
   0xd   : > { %p1503_p8 = pnand %p1170_p5, %p229_p7  ;;  %s1405_s14 = smov [#allocation7]  }
   0xe   : > { %s1898_s11 = scalar_select %p1493_p4, 1, 0 }
   0xf   : > { %s1899_s12 = scalar_select %p1498_p6, 1, 0 }
  0x10   : > { %s1900_s13 = scalar_select %p1503_p8, 1, 0 }
  0x11   : > { %s245_s15 = sshll.u32 %s1405_s14, 4  ;;  %p1216_p10 = pneg %p1503_p8  ;;  %s246_s15 = int_to_ptr.vmem [resolvable:$true] %s245_s15 }
  0x12   : > { %s1511_s16 = sadd.s32 1, %s1403_s30   ;;  %s32_s20 = sadd.s32 1, %s1399_s29 }
  0x13   : > { %p1515_p11 = pnand %p1216_p10, %p1891_p1  ;;  %s29_s18 = ssub.s32 %s1403_s30, %s1511_s16 }
  0x14   : > { %p1521_p12 = scmp.eq.s32.totalorder %s29_s18, 0  ;;  %p39_p13 = scmp.ne.s32.totalorder %s1399_s29, %s1395_s28 }
  0x15   : > { %p1283_p0 = pneg %p1515_p11  ;;  %s1292_s21 = scalar_lea.vmem %s246_s15, 128 }
  0x16   : > { %p1293_p3 = scmp.ne.s32.totalorder %s246_s15, %s1292_s21  ;;  %p1300_p9 = scmp.lt.s32.totalorder %s246_s15, %s246_s15 }
  0x17   : > { %p1301_p2 = scmp.lt.s32.totalorder %s1292_s21, %s1292_s21 }
  0x18   : > { %p1295_p5 = pnand %p1293_p3, %p1283_p0 }
  0x19   : > { %p1302_p10 = por %p1301_p2, %p1300_p9 }
  0x1a   : > { %p1296_p7 = pneg %p1295_p5 }
  0x1c   : > { %p1303_p1 = pnand %p1302_p10, %p1296_p7 }
  0x1e   : > { %1306 = shalt.err (!%p1303_p1)
}
  0x1f   : > { %s1903_s2 = sld [smem:[#allocation15_spill]]  ;;  %p40_p1 = scmp.eq.s32.totalorder %s1403_s30, 0 }
  0x20   : > { %s1538_s24 = scalar_select %p1521_p12, %s1399_s29, %s32_s20  }
  0x21   : > { %p1905_p2 = scmp.eq.s32.totalorder %s1484_s9, 1  ;;  %p1229_p0 = scmp.lt.s32.totalorder %s1403_s30, 2 }
  0x22   : > { %1904 = sst [smem:[#allocation14_spill]] %s1538_s24  ;;  %s271_s26 = sand.u32 1, %s1399_s29  }
  0x23   : > { %p1546_p9 = por %p1905_p2, %p39_p13  ;;  %p41_p3 = por %p40_p1, %p39_p13 }
  0x24   : > { %s1173_s10 = sshll.u32 %s271_s26, 3  ;;  %s1206_s14 = sshll.u32 %s1403_s30, 7 }
  0x25   : > { %1219 = dma.hbm_to_vmem [thread:$0]  (!%p1515_p11), %s1903_s2, 128, %s246_s15, [#allocation8]  }
  0x26   : > { %s1906_s25 = scalar_select %p1546_p9, 1, 0 }
  0x27   : > { %s1559_s15 = scalar_lea.hbm %s1882_s0, %s1206_s14  ;;  %s275_s19 = scalar_lea.vmem [#allocation4], %s1173_s10 }
  0x28   : > { %s283_s20 = sshll.u32 %s275_s19, 4  ;;  %p1561_p11 = pnand %p1229_p0, %p41_p3  ;;  %s284_s20 = int_to_ptr.vmem [resolvable:$true] %s283_s20 }
  0x29   : > { %s272_s22 = scalar_lea.sflag [#allocation5], %s271_s26  ;;  %s1307_s23 = scalar_lea.hbm %s1559_s15, 128 }
  0x2a   : > { %p1308_p12 = scmp.ne.s32.totalorder %s1559_s15, %s1307_s23  ;;  %p1309_p13 = pneg %p1561_p11 }
  0x2b   : > { %s1312_s18 = scalar_lea.hbm %s1882_s0, 256  ;;  %p1313_p10 = scmp.lt.s32.totalorder %s1559_s15, %s1882_s0 }
  0x2c   : > { %p1310_p5 = pnand %p1309_p13, %p1308_p12  ;;  %p1314_p1 = scmp.lt.s32.totalorder %s1312_s18, %s1307_s23 }
  0x2e   : > { %p1311_p7 = pneg %p1310_p5  ;;  %p1315_p2 = por %p1314_p1, %p1313_p10 }
  0x30   : > { %p1316_p0 = pnand %p1315_p2, %p1311_p7 }
  0x32   : > { %1319 = shalt.err (!%p1316_p0)
}
  0x33   : > { %s1320_s19 = scalar_lea.vmem %s284_s20, 128  ;;  %s1406_s26 = smov [#allocation4]  }
  0x34   : > { %p1321_p3 = scmp.ne.s32.totalorder %s284_s20, %s1320_s19  ;;  %s1325_s24 = sshll.u32 %s1406_s26, 4  ;;  %s1326_s24 = int_to_ptr.vmem [resolvable:$false] %s1325_s24 }
  0x35   : > { %s1327_s29 = scalar_lea.vmem %s1326_s24, 256  ;;  %p1328_p12 = scmp.lt.s32.totalorder %s284_s20, %s1326_s24 }
  0x36   : > { %p1323_p6 = pnand %p1321_p3, %p1309_p13  ;;  %p1329_p5 = scmp.lt.s32.totalorder %s1327_s29, %s1320_s19 }
  0x38   : > { %p1324_p9 = pneg %p1323_p6  ;;  %p1330_p4 = por %p1329_p5, %p1328_p12 }
  0x3a   : > { %p1331_p8 = pnand %p1330_p4, %p1324_p9 }
  0x3c   : > { %1334 = shalt.err (!%p1331_p8)
}
  0x3d   : > { %1223 = dma.hbm_to_vmem [thread:$0]  (!%p1561_p11), %s1559_s15, 128, %s284_s20, %s272_s22  }
  0x3e   : > { %p1908_p7 = scmp.ne.s32.totalorder %s1900_s13, 0 }
  0x3f   : > { %s1582_s2 = sand.u32 (!%p1908_p7), 1, %s1395_s28   ;;  %p1909_p6 = scmp.ne.s32.totalorder (!%p1908_p7), %s1898_s11, 0 }
  0x40   : > { %292 = sbr.rel (%p1908_p7) target bundleno = 1325 (0x52d), region = 52  ;;  %s1177_s23 = sshll.u32 (!%p1908_p7), %s1582_s2, 3 }
  0x41   : > { %s295_s14 = scalar_lea.sflag (!%p1908_p7), [#allocation5], %s1582_s2  ;;  %s298_s24 = scalar_lea.vmem (!%p1908_p7), [#allocation4], %s1177_s23 }
  0x45   : > { %1378 = dma.done.wait (%p1909_p6), %s295_s14, 128  }
  0x46   : > { %1380 = vsyncadd (%p1909_p6), %s295_s14, 4294967168  ;;  %p1910_p4 = scmp.eq.s32.totalorder %s1484_s9, 0 }
  0x48   : > { %1382 = dma.done.wait (%p1910_p4), [#allocation8], 128   ;;  %p1911_p8 = pmov %p1910_p4 }
  0x49   : > { %v1594_v0 = vld [vmem:[%s298_s24] sm:$0xff]  ;;  %s1407_s29 = smov 111   ;;  %s1408_s13 = smov 112   ;;  %v1414_v2 = vmov 0.0   ;;  %v1416_v3 = vmov 0   ;;  %v571_v4 = vld [vmem:[%s1885_s3] sm:$0xff]  ;;  %v345_v5 = vlaneseq }
  0x4a   : > { %1384 = vsyncadd (%p1911_p8), [#allocation8], 4294967168  ;;  %536 = vrot.lane.b32.xlu1 %v1594_v0, %s1407_s29  ;;  %450 = vst [vmem:[#allocation2 + $0x48] sm:$0xf] %v1594_v0  ;;  %506 = vrot.lane.b32.xlu0 %v1594_v0, %s1408_s13  ;;  %v339_v1 = vcombine.high %v1594_v0, %v1594_v0  ;;  %s1409_s11 = smov 127   ;;  %s1410_s15 = smov 113  }
  0x4b   : > { %s1411_s20 = smov 1   ;;  %s1412_s21 = smov 16   ;;  %652 = vmatprep.mubr.f32.mxu0 %v1414_v2  ;;  %950 = vmatprep.mubr.f32.mxu1 %v1414_v2  ;;  %v353_v6 = vshrl.u32 %v345_v5, 7  ;;  %v1628_v7 = vand.u32 127, %v345_v5  ;;  %vm581_vm4 = vcmask 1043456   ;;  %vm577_vm9 = vcmask 293888  }
  0x4c   : > { %451 = vst [vmem:[#allocation2 + $0x28] sm:$0xf] %v339_v1  ;;  %s1413_s22 = smov 15   ;;  %s1415_s17 = smov 17   ;;  %1275 = vset.pattern.permute.xlu0 %v1416_v3  ;;  %vm882_vm10 = vcmask 588800   ;;  %vm993_vm11 = vcmask 31744  }
  0x4d   : > { %v1630_v8 = vsub.s32 0, %v353_v6  ;;  %v1632_v9 = vsub.s32 1, %v353_v6  ;;  %v1186_v10 = vld [vmem:[%s1883_s1 + $0x10] ss:$8 sm:$0x3]  ;;  %vm540_vm0 = vcmp.lt.s32.totalorder %v1628_v7, 111 }
  0x4e   : > { %452 = vrot.lane.b32.xlu0 %v1594_v0, %s1409_s11  ;;  %538 = vrot.lane.b32.xlu1 %v339_v1, %s1407_s29  ;;  %v1183_v15 = vld [vmem:[%s1883_s1 + $0x5] ss:$8 sm:$0x3]  ;;  %v1185_v16 = vld [vmem:[%s1883_s1 + $0x7] ss:$8 sm:$0x3] }
  0x4f   : > { %v549_v13 = vrot.slane %v1186_v10, %v1630_v8  ;;  %v553_v14 = vrot.slane %v1186_v10, %v1632_v9  ;;  %vm456_vm1 = vcmp.lt.s32.totalorder %v1628_v7, 127  ;;  %vm510_vm2 = vcmp.lt.s32.totalorder %v1628_v7, 112  ;;  %v1184_v23 = vld [vmem:[%s1883_s1 + $0x6] ss:$8 sm:$0x3]  ;;  %s1179_s14 = sshll.u32 %s1582_s2, 4 }
  0x50   : > { %v465_v21 = vrot.slane %v1183_v15, %v1630_v8  ;;  %v469_v22 = vrot.slane %v1183_v15, %v1632_v9  ;;  %v519_v26 = vrot.slane %v1185_v16, %v1630_v8  ;;  %v523_v27 = vrot.slane %v1185_v16, %v1632_v9  ;;  %v1182_v40 = vld [vmem:[%s1883_s1 + $0x3] ss:$8 sm:$0x3]  ;;  %v1180_v53 = vld [vmem:[%s1883_s1 + $0x1] ss:$8 sm:$0x3] }
  0x51   : > { %vm486_vm3 = vcmp.lt.s32.totalorder %v1628_v7, 113  ;;  %v495_v30 = vrot.slane %v1184_v23, %v1630_v8  ;;  %v499_v31 = vrot.slane %v1184_v23, %v1632_v9  ;;  %vm424_vm5 = vcmp.lt.s32.totalorder %v1628_v7, 1  ;;  %s1207_s24 = sshll.u32 %s1484_s9, 8  ;;  %s334_s18 = scalar_lea.vmem [#allocation9], %s1179_s14 }
  0x52   : > { %454 = vrot.lane.b32.xlu1 %v339_v1, %s1409_s11  ;;  %508 = vrot.lane.b32.xlu0 %v339_v1, %s1408_s13  ;;  %v433_v51 = vrot.slane %v1182_v40, %v1630_v8  ;;  %v437_v52 = vrot.slane %v1182_v40, %v1632_v9  ;;  %vm370_vm6 = vcmp.lt.s32.totalorder %v1628_v7, 16  ;;  %v379_v62 = vrot.slane %v1180_v53, %v1630_v8  ;;  %s1089_s10 = sshll.u32 %s334_s18, 4  ;;  %p1912_p11 = scmp.ne.s32.totalorder %s1906_s25, 0  ;;  %s1090_s10 = int_to_ptr.vmem [resolvable:$true] %s1089_s10 }
  0x53   : > { %v383_v63 = vrot.slane %v1180_v53, %v1632_v9  ;;  %vm400_vm7 = vcmp.lt.s32.totalorder %v1628_v7, 15  ;;  %vm347_vm8 = vcmp.lt.s32.totalorder %v1628_v7, 17 }
  0x56   : > { %484 = vrot.lane.b32.xlu1 %v339_v1, %s1410_s15  ;;  %482 = vrot.lane.b32.xlu0 %v1594_v0, %s1410_s15 }
  0x5a   : > { %422 = vrot.lane.b32.xlu1 %v339_v1, %s1411_s20  ;;  %420 = vrot.lane.b32.xlu0 %v1594_v0, %s1411_s20 }
  0x5e   : > { %368 = vrot.lane.b32.xlu1 %v339_v1, %s1412_s21  ;;  %366 = vrot.lane.b32.xlu0 %v1594_v0, %s1412_s21 }
  0x62   : > { %398 = vrot.lane.b32.xlu1 %v339_v1, %s1413_s22  ;;  %396 = vrot.lane.b32.xlu0 %v1594_v0, %s1413_s22 }
  0x66   : > { %343 = vrot.lane.b32.xlu1 %v339_v1, %s1415_s17  ;;  %341 = vrot.lane.b32.xlu0 %v1594_v0, %s1415_s17  ;;  %v1181_v1 = vld [vmem:[%s1883_s1 + $0x2] ss:$8 sm:$0x3] }
  0x67   : > { %v413_v15 = vrot.slane %v1181_v1, %v1632_v9 }
  0x6a   : > { %574 = vperm.xlu0 %1275, %v571_v4  }
  0xbc   : > { %v537_v11 = vpop.permute.xlu1 %536  ;;  %v507_v12 = vpop.permute.xlu0 %506 }
  0xc0   : > { %v453_v17 = vpop.permute.xlu0 %452  ;;  %v539_v18 = vpop.permute.xlu1 %538 }
  0xc1   : > { %v541_v19 = vsel %vm540_vm0, %v537_v11, %v539_v18  ;;  %v542_v20 = vsel %vm540_vm0, %v539_v18, %v537_v11  ;;  %v350_v18 = vld [vmem:[%s1883_s1] ss:$8 sm:$0x3] }
  0xc2   : > { %v556_v24 = vmul.f32 %v549_v13, %v541_v19  ;;  %v557_v25 = vmul.f32 %v553_v14, %v542_v20  ;;  %v409_v14 = vrot.slane %v1181_v1, %v1630_v8  ;;  %v876_v1 = vld [vmem:[%s1887_s5] sm:$0xf] }
  0xc4   : > { %558 = vst [vmem:[#allocation2 + $0x40] sm:$0xf] %v556_v24  ;;  %559 = vst [vmem:[#allocation2 + $0x38] sm:$0xf] %v557_v25  ;;  %v455_v28 = vpop.permute.xlu1 %454  ;;  %v509_v29 = vpop.permute.xlu0 %508 }
  0xc5   : > { %v457_v32 = vsel %vm456_vm1, %v453_v17, %v455_v28  ;;  %v458_v33 = vsel %vm456_vm1, %v455_v28, %v453_v17  ;;  %v511_v34 = vsel %vm510_vm2, %v507_v12, %v509_v29  ;;  %v512_v35 = vsel %vm510_vm2, %v509_v29, %v507_v12 }
  0xc6   : > { %v472_v36 = vmul.f32 %v465_v21, %v457_v32  ;;  %v473_v37 = vmul.f32 %v469_v22, %v458_v33  ;;  %v526_v38 = vmul.f32 %v519_v26, %v511_v34  ;;  %v527_v39 = vmul.f32 %v523_v27, %v512_v35 }
  0xc7   : > { %v355_v29 = vrot.slane %v350_v18, %v1630_v8 }
  0xc8   : > { %v476_v41 = vrot.slane %v472_v36, 4  ;;  %v477_v42 = vrot.slane %v473_v37, 4  ;;  %v530_v43 = vrot.slane %v526_v38, 4  ;;  %v531_v44 = vrot.slane %v527_v39, 4  ;;  %v485_v45 = vpop.permute.xlu1 %484  ;;  %v483_v46 = vpop.permute.xlu0 %482 }
  0xc9   : > { %v487_v47 = vsel %vm486_vm3, %v483_v46, %v485_v45  ;;  %v488_v48 = vsel %vm486_vm3, %v485_v45, %v483_v46 }
  0xca   : > { %480 = vst [vmem:[#allocation2 + $0x48] sm:$0xf0] %v476_v41  ;;  %481 = vst [vmem:[#allocation2 + $0x28] sm:$0xf0] %v477_v42  ;;  %v502_v49 = vmul.f32 %v495_v30, %v487_v47  ;;  %v503_v50 = vmul.f32 %v499_v31, %v488_v48  ;;  %v359_v30 = vrot.slane %v350_v18, %v1632_v9  ;;  %v560_v41 = vld [vmem:[#allocation7] sm:$0xff] }
  0xcb   : > { %534 = vst [vmem:[#allocation2 + $0x8] sm:$0xf0] %v530_v43  ;;  %535 = vst [vmem:[#allocation2 + $0x20] sm:$0xf0] %v531_v44  ;;  %v570_v54 = vld [vmem:[#allocation2 + $0x38] sm:$0xf] }
  0xcc   : > { %v569_v55 = vld [vmem:[#allocation2 + $0x40] sm:$0xf]  ;;  %504 = vst [vmem:[#allocation2 + $0x8] sm:$0xf] %v502_v49  ;;  %505 = vst [vmem:[#allocation2 + $0x20] sm:$0xf] %v503_v50  ;;  %1187 = vmatprep.subr.msk.mxu0 %vm581_vm4, %v570_v54  ;;  %v423_v56 = vpop.permute.xlu1 %422  ;;  %v421_v57 = vpop.permute.xlu0 %420 }
  0xcd   : > { %v425_v58 = vsel %vm424_vm5, %v421_v57, %v423_v56  ;;  %v426_v59 = vsel %vm424_vm5, %v423_v56, %v421_v57  ;;  %1188 = vmatpush1.msk.msra.mxu0 %vm581_vm4, %v569_v55 }
  0xce   : > { %v440_v60 = vmul.f32 %v433_v51, %v426_v59  ;;  %v441_v61 = vmul.f32 %v437_v52, %v425_v58 }
  0xd0   : > { %v444_v3 = vrot.slane %v440_v60, 4  ;;  %v445_v4 = vrot.slane %v441_v61, 4  ;;  %v369_v5 = vpop.permute.xlu1 %368  ;;  %v367_v6 = vpop.permute.xlu0 %366 }
  0xd1   : > { %v371_v10 = vsel %vm370_vm6, %v367_v6, %v369_v5  ;;  %v372_v11 = vsel %vm370_vm6, %v369_v5, %v367_v6  ;;  %v566_v25 = vld [vmem:[#allocation2 + $0x28] sm:$0xff] }
  0xd2   : > { %448 = vst [vmem:[#allocation2 + $0x18] sm:$0xf0] %v444_v3  ;;  %449 = vst [vmem:[#allocation2 + $0x10] sm:$0xf0] %v445_v4  ;;  %v386_v12 = vmul.f32 %v379_v62, %v372_v11  ;;  %v387_v13 = vmul.f32 %v383_v63, %v371_v10  ;;  %v565_v28 = vld [vmem:[#allocation2 + $0x48] sm:$0xff] }
  0xd3   : > { %v568_v16 = vld [vmem:[#allocation2 + $0x20] sm:$0xff]  ;;  %v567_v17 = vld [vmem:[#allocation2 + $0x8] sm:$0xff]  ;;  %v1196_v3 = vld [vmem:[%s1883_s1 + $0x10] ss:$8 sm:$0x3] }
  0xd4   : > { %v390_v19 = vrot.slane %v386_v12, 4  ;;  %v391_v20 = vrot.slane %v387_v13, 4  ;;  %v399_v21 = vpop.permute.xlu1 %398  ;;  %612 = vmatprep.subr.mxu0 %v568_v16  ;;  %v397_v22 = vpop.permute.xlu0 %396  ;;  %v850_v4 = vrot.slane %v1196_v3, %v1632_v9  ;;  %v846_v5 = vrot.slane %v1196_v3, %v1630_v8 }
  0xd5   : > { %v401_v23 = vsel %vm400_vm7, %v397_v22, %v399_v21  ;;  %v402_v24 = vsel %vm400_vm7, %v399_v21, %v397_v22  ;;  %613 = vmatpush1.msra.mxu0 %v567_v17 }
  0xd6   : > { %394 = vst [vmem:[#allocation2 + $0x30] sm:$0xf0] %v390_v19  ;;  %395 = vst [vmem:[#allocation2] sm:$0xf0] %v391_v20  ;;  %v416_v26 = vmul.f32 %v409_v14, %v402_v24  ;;  %v417_v27 = vmul.f32 %v413_v15, %v401_v23  ;;  %614 = vmatprep.subr.mxu0 %v566_v25 }
  0xd7   : > { %615 = vmatpush1.msra.mxu0 %v565_v28  ;;  %v1195_v15 = vld [vmem:[%s1883_s1 + $0x7] ss:$8 sm:$0x3]  ;;  %v1194_v20 = vld [vmem:[%s1883_s1 + $0x6] ss:$8 sm:$0x3] }
  0xd8   : > { %418 = vst [vmem:[#allocation2 + $0x18] sm:$0xf] %v416_v26  ;;  %419 = vst [vmem:[#allocation2 + $0x10] sm:$0xf] %v417_v27  ;;  %v344_v31 = vpop.permute.xlu1 %343  ;;  %v342_v32 = vpop.permute.xlu0 %341  ;;  %v824_v18 = vrot.slane %v1195_v15, %v1630_v8  ;;  %v828_v19 = vrot.slane %v1195_v15, %v1632_v9  ;;  %v802_v27 = vrot.slane %v1194_v20, %v1630_v8 }
  0xd9   : > { %v348_v33 = vsel %vm347_vm8, %v342_v32, %v344_v31  ;;  %v349_v34 = vsel %vm347_vm8, %v344_v31, %v342_v32  ;;  %v806_v28 = vrot.slane %v1194_v20, %v1632_v9 }
  0xda   : > { %v362_v35 = vmul.f32 %v355_v29, %v349_v34  ;;  %v363_v36 = vmul.f32 %v359_v30, %v348_v33  ;;  %v1193_v29 = vld [vmem:[%s1883_s1 + $0x5] ss:$8 sm:$0x3] }
  0xdc   : > { %364 = vst [vmem:[#allocation2 + $0x30] sm:$0xf] %v362_v35  ;;  %365 = vst [vmem:[#allocation2] sm:$0xf] %v363_v36  ;;  %v780_v36 = vrot.slane %v1193_v29, %v1630_v8 }
  0xdf   : > { %v564_v37 = vld [vmem:[#allocation2 + $0x10] sm:$0xff]  ;;  %v563_v38 = vld [vmem:[#allocation2 + $0x18] sm:$0xff] }
  0xe0   : > { %616 = vmatprep.subr.mxu0 %v564_v37  ;;  %v784_v37 = vrot.slane %v1193_v29, %v1632_v9  ;;  %v985_v29 = vld [vmem:[%s1889_s7] sm:$0xff] }
  0xe1   : > { %617 = vmatpush1.msra.mxu0 %v563_v38  ;;  %v1192_v38 = vld [vmem:[%s1883_s1 + $0x3] ss:$8 sm:$0x3] }
  0xe3   : > { %v562_v39 = vld [vmem:[#allocation2] sm:$0xff]  ;;  %v561_v40 = vld [vmem:[#allocation2 + $0x30] sm:$0xff] }
  0xe4   : > { %618 = vmatprep.subr.mxu0 %v562_v39 }
  0xe5   : > { %619 = vmatpush1.msra.mxu0 %v561_v40  ;;  %v575_v42 = vpop.permute.xlu0 %574 }
  0xe6   : > { %1189 = vmatmul.mubr.msk.f32.vlgmr.msra.gmra.mxu0 %vm577_vm9, %v560_v41 }
  0xe7   : > { %1065 = vmatprep.mubr.f32.mxu0 %v1414_v2 }
 0x1a6   : > { %v654_v43 = vpop.f32.mrf.mxu0 }
 0x1a7   : > { %v655_v44 = vadd.f32 %v654_v43, %v575_v42 }
 0x1a8   : > { %v656_v45 = vpop.f32.mrf.mxu0 }
 0x1a9   : > { %v657_v46 = vadd.f32 %v656_v45, %v575_v42  ;;  %v662_v48 = vmul.f32 %v655_v44, %v655_v44  ;;  %v760_v45 = vrot.slane %v1192_v38, %v1632_v9 }
 0x1ab   : > { %v659_v47 = vadd.f32 %v657_v46, %v655_v44  ;;  %v663_v49 = vmul.f32 %v657_v46, %v657_v46 }
 0x1ad   : > { %660 = vadd.xlane.f32.xlu1 %v659_v47  ;;  %v664_v50 = vadd.f32 %v663_v49, %v662_v48 }
 0x1af   : > { %665 = vadd.xlane.f32.xlu0 %v664_v50 }
 0x236   : > { %v661_v51 = vpop.xlane.xlu1 %660 }
 0x237   : > { %v667_v52 = vmul.f32 0.00390625, %v661_v51 }
 0x238   : > { %v666_v53 = vpop.xlane.xlu0 %665 }
 0x239   : > { %v668_v54 = vmul.f32 0.00390625, %v666_v53  ;;  %v669_v55 = vmul.f32 %v667_v52, %v667_v52  ;;  %v671_v2 = vsub.f32 %v655_v44, %v667_v52  ;;  %v672_v58 = vsub.f32 %v657_v46, %v667_v52  ;;  %v1191_v46 = vld [vmem:[%s1883_s1 + $0x2] ss:$8 sm:$0x3] }
 0x23a   : > { %v756_v44 = vrot.slane %v1192_v38, %v1630_v8  ;;  %v734_v53 = vrot.slane %v1191_v46, %v1630_v8 }
 0x23b   : > { %v670_v56 = vsub.f32 %v668_v54, %v669_v55  ;;  %v738_v54 = vrot.slane %v1191_v46, %v1632_v9  ;;  %v1190_v55 = vld [vmem:[%s1883_s1 + $0x1] ss:$8 sm:$0x3] }
 0x23d   : > { %v673_v57 = vadd.f32 1e-05, %v670_v56 }
 0x23f   : > { %1277 = vrsqrt.f32 %v673_v57 }
 0x24c   : > { %v1278_v59 = vpop.eup %1277 }
 0x24d   : > { %v675_v60 = vmul.f32 %v1278_v59, %v671_v2  ;;  %v676_v61 = vmul.f32 %v1278_v59, %v672_v58 }
 0x24f   : > { %v1717_v62 = vmax.f32 %v675_v60, 0.0  ;;  %v1719_v63 = vmax.f32 %v676_v61, 0.0  ;;  %v712_v61 = vrot.slane %v1190_v55, %v1630_v8 }
 0x251   : > { %837 = vrot.lane.b32.xlu0 %v1719_v63, %s1407_s29  ;;  %835 = vrot.lane.b32.xlu1 %v1717_v62, %s1407_s29  ;;  %s1087_s29 = scalar_lea.hbm %s1890_s8, %s1207_s24 }
 0x255   : > { %791 = vrot.lane.b32.xlu0 %v1717_v62, %s1410_s15  ;;  %813 = vrot.lane.b32.xlu1 %v1717_v62, %s1408_s13 }
 0x259   : > { %769 = vrot.lane.b32.xlu0 %v1717_v62, %s1409_s11  ;;  %815 = vrot.lane.b32.xlu1 %v1719_v63, %s1408_s13  ;;  %s1075_s13 = scalar_lea.sflag [#allocation6], %s1582_s2 }
 0x25d   : > { %745 = vrot.lane.b32.xlu0 %v1717_v62, %s1411_s20  ;;  %793 = vrot.lane.b32.xlu1 %v1719_v63, %s1410_s15  ;;  %s1417_s15 = smov [#allocation9]  }
 0x25e   : > { %s1339_s9 = sshll.u32 %s1417_s15, 4  ;;  %s1340_s9 = int_to_ptr.vmem [resolvable:$false] %s1339_s9 }
 0x25f   : > { %p1342_p1 = scmp.lt.s32.totalorder %s1090_s10, %s1340_s9 }
 0x261   : > { %723 = vrot.lane.b32.xlu0 %v1717_v62, %s1413_s22  ;;  %771 = vrot.lane.b32.xlu1 %v1719_v63, %s1409_s11  ;;  %s1335_s11 = scalar_lea.vmem %s1090_s10, 256 }
 0x262   : > { %p1336_p9 = scmp.ne.s32.totalorder %s1090_s10, %s1335_s11 }
 0x264   : > { %p1337_p13 = pnand %p1336_p9, %p1912_p11 }
 0x265   : > { %701 = vrot.lane.b32.xlu0 %v1717_v62, %s1412_s21  ;;  %747 = vrot.lane.b32.xlu1 %v1719_v63, %s1411_s20  ;;  %s1341_s20 = scalar_lea.vmem %s1340_s9, 512 }
 0x266   : > { %p1338_p10 = pneg %p1337_p13  ;;  %p1343_p2 = scmp.lt.s32.totalorder %s1341_s20, %s1335_s11 }
 0x268   : > { %p1344_p0 = por %p1343_p2, %p1342_p1 }
 0x269   : > { %679 = vrot.lane.b32.xlu0 %v1717_v62, %s1415_s17  ;;  %725 = vrot.lane.b32.xlu1 %v1719_v63, %s1413_s22 }
 0x26a   : > { %p1345_p3 = pnand %p1344_p0, %p1338_p10 }
 0x26d   : > { %879 = vperm.xlu0 %1275, %v876_v1   ;;  %703 = vrot.lane.b32.xlu1 %v1719_v63, %s1412_s21 }
 0x271   : > { %681 = vrot.lane.b32.xlu1 %v1719_v63, %s1415_s17 }
 0x2c3   : > { %v838_v6 = vpop.permute.xlu0 %837  ;;  %v836_v10 = vpop.permute.xlu1 %835 }
 0x2c4   : > { %v839_v11 = vsel %vm540_vm0, %v836_v10, %v838_v6  ;;  %v840_v12 = vsel %vm540_vm0, %v838_v6, %v836_v10 }
 0x2c5   : > { %v854_v13 = vmul.f32 %v850_v4, %v840_v12  ;;  %v853_v14 = vmul.f32 %v846_v5, %v839_v11 }
 0x2c7   : > { %v792_v16 = vpop.permute.xlu0 %791  ;;  %900 = vmatprep.subr.mxu1 %v854_v13  ;;  %v814_v17 = vpop.permute.xlu1 %813 }
 0x2c8   : > { %901 = vmatpush1.msra.mxu1 %v853_v14 }
 0x2cb   : > { %v770_v21 = vpop.permute.xlu0 %769  ;;  %v816_v22 = vpop.permute.xlu1 %815 }
 0x2cc   : > { %v817_v23 = vsel %vm510_vm2, %v814_v17, %v816_v22  ;;  %v818_v24 = vsel %vm510_vm2, %v816_v22, %v814_v17 }
 0x2cd   : > { %v831_v25 = vmul.f32 %v824_v18, %v817_v23  ;;  %v832_v26 = vmul.f32 %v828_v19, %v818_v24  ;;  %v857_v18 = vld [vmem:[%s1886_s4] sm:$0xf] }
 0x2cf   : > { %902 = vmatprep.subr.mxu1 %v832_v26  ;;  %v794_v30 = vpop.permute.xlu1 %793  ;;  %v746_v33 = vpop.permute.xlu0 %745 }
 0x2d0   : > { %v795_v31 = vsel %vm486_vm3, %v792_v16, %v794_v30  ;;  %v796_v32 = vsel %vm486_vm3, %v794_v30, %v792_v16  ;;  %903 = vmatpush1.msra.mxu1 %v831_v25 }
 0x2d1   : > { %v809_v34 = vmul.f32 %v802_v27, %v795_v31  ;;  %v810_v35 = vmul.f32 %v806_v28, %v796_v32 }
 0x2d3   : > { %904 = vmatprep.subr.mxu1 %v810_v35  ;;  %v772_v39 = vpop.permute.xlu1 %771  ;;  %v724_v47 = vpop.permute.xlu0 %723 }
 0x2d4   : > { %v773_v40 = vsel %vm456_vm1, %v770_v21, %v772_v39  ;;  %v774_v41 = vsel %vm456_vm1, %v772_v39, %v770_v21  ;;  %905 = vmatpush1.msra.mxu1 %v809_v34 }
 0x2d5   : > { %v787_v42 = vmul.f32 %v780_v36, %v773_v40  ;;  %v788_v43 = vmul.f32 %v784_v37, %v774_v41 }
 0x2d7   : > { %906 = vmatprep.subr.mxu1 %v788_v43  ;;  %v748_v48 = vpop.permute.xlu1 %747  ;;  %v702_v58 = vpop.permute.xlu0 %701 }
 0x2d8   : > { %v749_v49 = vsel %vm424_vm5, %v746_v33, %v748_v48  ;;  %v750_v50 = vsel %vm424_vm5, %v748_v48, %v746_v33  ;;  %907 = vmatpush1.msra.mxu1 %v787_v42 }
 0x2d9   : > { %v763_v51 = vmul.f32 %v756_v44, %v750_v50  ;;  %v764_v52 = vmul.f32 %v760_v45, %v749_v49  ;;  %908 = vmatprep.subr.mxu1 %v1719_v63  ;;  %v685_v63 = vld [vmem:[%s1883_s1] ss:$8 sm:$0x3] }
 0x2da   : > { %909 = vmatpush1.msra.mxu1 %v1717_v62  ;;  %v716_v62 = vrot.slane %v1190_v55, %v1632_v9  ;;  %v690_v10 = vrot.slane %v685_v63, %v1630_v8  ;;  %v694_v11 = vrot.slane %v685_v63, %v1632_v9  ;;  %v984_v45 = vld [vmem:[%s1888_s6] sm:$0xff] }
 0x2db   : > { %910 = vmatprep.subr.mxu1 %v764_v52  ;;  %v726_v56 = vpop.permute.xlu1 %725  ;;  %v680_v12 = vpop.permute.xlu0 %679 }
 0x2dc   : > { %v727_v57 = vsel %vm400_vm7, %v724_v47, %v726_v56  ;;  %v728_v2 = vsel %vm400_vm7, %v726_v56, %v724_v47  ;;  %911 = vmatpush1.msra.mxu1 %v763_v51 }
 0x2dd   : > { %v741_v59 = vmul.f32 %v734_v53, %v728_v2  ;;  %v742_v60 = vmul.f32 %v738_v54, %v727_v57 }
 0x2df   : > { %912 = vmatprep.subr.mxu1 %v742_v60  ;;  %v704_v1 = vpop.permute.xlu1 %703 }
 0x2e0   : > { %v705_v3 = vsel %vm370_vm6, %v702_v58, %v704_v1  ;;  %v706_v4 = vsel %vm370_vm6, %v704_v1, %v702_v58  ;;  %913 = vmatpush1.msra.mxu1 %v741_v59 }
 0x2e1   : > { %v719_v5 = vmul.f32 %v712_v61, %v706_v4  ;;  %v720_v6 = vmul.f32 %v716_v62, %v705_v3 }
 0x2e3   : > { %914 = vmatprep.subr.mxu1 %v720_v6  ;;  %v682_v13 = vpop.permute.xlu1 %681 }
 0x2e4   : > { %v683_v14 = vsel %vm347_vm8, %v680_v12, %v682_v13  ;;  %v684_v15 = vsel %vm347_vm8, %v682_v13, %v680_v12  ;;  %915 = vmatpush1.msra.mxu1 %v719_v5 }
 0x2e5   : > { %v697_v16 = vmul.f32 %v690_v10, %v684_v15  ;;  %v698_v17 = vmul.f32 %v694_v11, %v683_v14 }
 0x2e7   : > { %916 = vmatprep.subr.mxu1 %v698_v17 }
 0x2e8   : > { %917 = vmatpush1.msra.mxu1 %v697_v16  ;;  %v880_v8 = vpop.permute.xlu0 %879 }
 0x2e9   : > { %1197 = vmatmul.mubr.msk.f32.vlgmr.msra.gmra.mxu1 %vm882_vm10, %v857_v18 }
 0x3a9   : > { %v952_v9 = vpop.f32.mrf.mxu1 }
 0x3aa   : > { %v953_v19 = vadd.f32 %v952_v9, %v880_v8 }
 0x3ab   : > { %v954_v20 = vpop.f32.mrf.mxu1 }
 0x3ac   : > { %v955_v21 = vadd.f32 %v954_v20, %v880_v8  ;;  %v962_v22 = vmul.f32 %v953_v19, %v953_v19  ;;  %v957_v7 = vsel %vm581_vm4, %v953_v19, 0.0 }
 0x3ae   : > { %v958_v23 = vsel %vm581_vm4, %v955_v21, 0.0  ;;  %v963_v24 = vmul.f32 %v955_v21, %v955_v21  ;;  %v964_v26 = vsel %vm581_vm4, %v962_v22, 0.0 }
 0x3af   : > { %v959_v25 = vadd.f32 %v958_v23, %v957_v7 }
 0x3b0   : > { %v965_v27 = vsel %vm581_vm4, %v963_v24, 0.0 }
 0x3b1   : > { %960 = vadd.xlane.f32.xlu1 %v959_v25  ;;  %v966_v28 = vadd.f32 %v965_v27, %v964_v26 }
 0x3b3   : > { %967 = vadd.xlane.f32.xlu0 %v966_v28 }
 0x3c9   : > { %988 = vperm.xlu0 %1275, %v985_v29  }
 0x43a   : > { %v961_v30 = vpop.xlane.xlu1 %960 }
 0x43b   : > { %v969_v31 = vmul.f32 0.00390625, %v961_v30 }
 0x43c   : > { %v968_v32 = vpop.xlane.xlu0 %967 }
 0x43d   : > { %v971_v33 = vmul.f32 %v969_v31, %v969_v31  ;;  %v970_v34 = vmul.f32 0.00390625, %v968_v32  ;;  %v973_v37 = vsub.f32 %v953_v19, %v969_v31  ;;  %v974_v38 = vsub.f32 %v955_v21, %v969_v31 }
 0x43f   : > { %v972_v35 = vsub.f32 %v970_v34, %v971_v33 }
 0x441   : > { %v975_v36 = vadd.f32 1e-05, %v972_v35 }
 0x443   : > { %1279 = vrsqrt.f32 %v975_v36 }
 0x444   : > { %v989_v46 = vpop.permute.xlu0 %988 }
 0x450   : > { %v1280_v39 = vpop.eup %1279 }
 0x451   : > { %v977_v40 = vmul.f32 %v1280_v39, %v973_v37  ;;  %v978_v41 = vmul.f32 %v1280_v39, %v974_v38 }
 0x453   : > { %v981_v42 = vcombine.low %v977_v40, %v978_v41 }
 0x455   : > { %v983_v43 = vadd.f32 %v981_v42, %v1594_v0 }
 0x457   : > { %v992_v44 = vcombine.high %v983_v43, %v983_v43 }
 0x459   : > { %1198 = vmatprep.subr.msk.mxu0 %vm581_vm4, %v992_v44 }
 0x45a   : > { %1199 = vmatpush1.msk.msra.mxu0 %vm581_vm4, %v983_v43 }
 0x45b   : > { %1200 = vmatmul.mubr.msk.f32.vlgmr.msra.gmra.mxu0 %vm993_vm11, %v984_v45 }
 0x51b   : > { %v1067_v47 = vpop.f32.mrf.mxu0 }
 0x51c   : > { %v1068_v0 = vadd.f32 %v1067_v47, %v989_v46 }
 0x51d   : > { %v1069_v48 = vpop.f32.mrf.mxu0 }
 0x51e   : > { %1072 = vst [vmem:[%s334_s18] sm:$0xff] %v1068_v0  ;;  %v1070_v49 = vadd.f32 %v1069_v48, %v989_v46 }
 0x520   : > { %1073 = vst [vmem:[%s334_s18 + $0x8] sm:$0xff] %v1070_v49 }
 0x521   : > { %1348 = shalt.err (!%p1345_p3)
}
 0x522   : > { %s1349_s21 = scalar_lea.hbm %s1087_s29, 256  ;;  %s1353_s17 = scalar_lea.hbm %s1890_s8, 512 }
 0x523   : > { %p1350_p12 = scmp.ne.s32.totalorder %s1087_s29, %s1349_s21  ;;  %p1354_p6 = scmp.lt.s32.totalorder %s1087_s29, %s1890_s8 }
 0x524   : > { %p1355_p4 = scmp.lt.s32.totalorder %s1353_s17, %s1349_s21 }
 0x525   : > { %p1351_p5 = pnand %p1350_p12, %p1912_p11 }
 0x526   : > { %p1356_p8 = por %p1355_p4, %p1354_p6 }
 0x527   : > { %p1352_p7 = pneg %p1351_p5 }
 0x529   : > { %p1357_p9 = pnand %p1356_p8, %p1352_p7 }
 0x52b   : > { %1360 = shalt.err (!%p1357_p9)
}
 0x52c   : > { %1214 = dma.vmem_to_hbm [thread:$0]  (%p1912_p11), %s1090_s10, 256, %s1087_s29, %s1075_s13  }
 0x52d PF: > { %s1101_s24 = sand.u32 1, %s1391_s27   ;;  %p1913_p13 = scmp.ne.s32.totalorder %s1899_s12, 0 }
 0x52e   : > { %p1914_p10 = scmp.ge.s32.totalorder %s1403_s30, 2  ;;  %s1102_s18 = scalar_lea.sflag [#allocation6], %s1101_s24 }
 0x530   : > { %p1225_p1 = pnand %p1914_p10, %p1913_p13 }
 0x532   : > { %p1226_p2 = pneg %p1225_p1 }
 0x534   : > { %1386 = dma.done.wait (%p1226_p2), %s1102_s18, 256  }
 0x535   : > { %1388 = vsyncadd (%p1226_p2), %s1102_s18, 4294967040  ;;  %s1915_s19 = sld [smem:[#allocation13_spill]]  ;;  %p22_p0 = scmp.ge.s32.totalorder %s1511_s16, 4  }
 0x536   : > { %s1916_s29 = sld [smem:[#allocation14_spill]]  ;;  %s1917_s27 = smov %s1395_s28 }
 0x537   : > { %s1919_s30 = smov %s1511_s16  ;;  %24 = sbr.rel (!%p22_p0) target bundleno = 8 (0x8), region = 108 }
 0x53b   : > { %s1918_s28 = smov %s1915_s19 }
 0x53c   :  { %1107 = vsyncpa [#allocation5], 1 }
 0x53d   :  { %1109 = vsyncpa [#allocation5 + $0x1], 1 }
 0x53e   :  { %1110 = vsyncpa [#allocation8], 1 }
 0x53f   :  { %1111 = vsyncpa [#allocation6], 1 }
 0x540   :  { %1113 = vsyncpa [#allocation6 + $0x1], 1 }

</bundles_post_ra>
